<compile_context>
chip_gen: v6e
topology: v6e:2x2x1
jax: 0.10.0
libtpu: 0.0.40
codegen_flags: <defaults>
</compile_context>

<pallas_src>
import functools

import jax
import jax.numpy as jnp
from jax import lax
from jax.experimental import pallas as pl
from jax.experimental.pallas import tpu as pltpu

LANES = 128
SUBLANES = 8
PAD_UNIT = SUBLANES * LANES          # 1024: rows stay a multiple of 8
MAX_BLOCK_ROWS = 1024                # 1024*128*4B = 512 KiB per f32 input block


def _wbce_kernel(x_ref, t_ref, out_ref, *, w_p, w_n, eps,
                 block_rows, bps, n_valid, needs_mask):
    c = pl.program_id(0)             # split index ("parallel")
    i = pl.program_id(1)             # block index within split ("arbitrary")

    @pl.when(i == 0)
    def _init():
        out_ref[...] = jnp.zeros_like(out_ref)

    x = x_ref[...].astype(jnp.float32)
    t = t_ref[...].astype(jnp.float32)

    if needs_mask:
        # Global validity mask: covers (a) the <1024-element tail pad,
        # (b) garbage rows Pallas leaves in partial boundary blocks, and
        # (c) duplicated (index-clamped) blocks past the end of the array.
        gblk = c * bps + i                      # UNclamped global block index
        row_ids = lax.broadcasted_iota(jnp.int32, x.shape, 0)
        lane_ids = lax.broadcasted_iota(jnp.int32, x.shape, 1)
        row_global = gblk * block_rows + row_ids
        n_full_rows = n_valid // LANES
        rem = n_valid % LANES
        valid = row_global < n_full_rows
        if rem:
            valid = jnp.logical_or(
                valid,
                jnp.logical_and(row_global == n_full_rows, lane_ids < rem))
        # Make masked-out inputs finite before the transcendentals.
        x = jnp.where(valid, x, 0.0)
        t = jnp.where(valid, t, 0.0)

    p = jax.nn.sigmoid(x)
    # weighted BCE contribution (module keeps the +eps inside the logs)
    elem = (w_p * t * jnp.log(p + eps)
            + w_n * (1.0 - t) * jnp.log(1.0 - p + eps))
    if needs_mask:
        elem = jnp.where(valid, elem, 0.0)

    # Reduce only along the leading (row) axis -> (8, 128) vector partials;
    # the cross-lane reduction happens once, outside the kernel, on a tiny
    # (num_splits*8, 128) array.
    br = elem.shape[0]
    out_ref[...] += jnp.sum(elem.reshape(br // SUBLANES, SUBLANES, LANES),
                            axis=0)


def w_bce_with_logits_loss(logits, labels, w_p=1.0, w_n=1.0, epsilon=1e-7,
                           max_block_rows=MAX_BLOCK_ROWS):
    """Matches W_BCEWithLogitsLoss(w_p, w_n).forward(logits, labels, epsilon)."""
    x = jnp.squeeze(logits)
    x, t = jnp.broadcast_arrays(x, labels)
    n = x.size                      # mean denominator (broadcast element count)

    # keep native floating dtypes in HBM (halves bytes moved for bf16 callers);
    # cast ints/bools to f32 so the kernel math is well defined.
    if not jnp.issubdtype(x.dtype, jnp.floating):
        x = x.astype(jnp.float32)
    if not jnp.issubdtype(t.dtype, jnp.floating):
        t = t.astype(jnp.float32)
    x_flat = jnp.reshape(x, (-1,))
    t_flat = jnp.reshape(t, (-1,))

    # Pad only up to a multiple of 1024 (8*128) so the free reshape to
    # (rows, 128) has rows % 8 == 0.  Common sizes hit pad == 0 -> zero-copy.
    n_padded = pl.cdiv(n, PAD_UNIT) * PAD_UNIT
    pad = n_padded - n
    if pad:
        x_flat = jnp.pad(x_flat, (0, pad))
        t_flat = jnp.pad(t_flat, (0, pad))
    rows = n_padded // LANES
    x2 = x_flat.reshape(rows, LANES)     # free reshape (row-major)
    t2 = t_flat.reshape(rows, LANES)

    block_rows = min(max_block_rows, rows)            # multiple of 8
    total_blocks = pl.cdiv(rows, block_rows)
    num_splits = 2 if total_blocks >= 2 else 1        # megacore split on v7x
    bps = pl.cdiv(total_blocks, num_splits)           # blocks per split
    # Do the grid steps cover exactly n real elements?  If not, mask in-kernel.
    needs_mask = (num_splits * bps * block_rows * LANES) != n

    def in_map(c, i):
        # Clamp so a split's trailing step never points past the last real
        # block (its contribution is zeroed by the validity mask anyway).
        return (jnp.minimum(c * bps + i, total_blocks - 1), 0)

    kernel = functools.partial(
        _wbce_kernel,
        w_p=float(w_p), w_n=float(w_n), eps=float(epsilon),
        block_rows=block_rows, bps=bps,
        n_valid=n, needs_mask=needs_mask)

    partials = pl.pallas_call(
        kernel,
        out_shape=jax.ShapeDtypeStruct((num_splits * SUBLANES, LANES),
                                       jnp.float32),
        grid_spec=pltpu.PrefetchScalarGridSpec(
            num_scalar_prefetch=0,
            grid=(num_splits, bps),
            in_specs=[
                pl.BlockSpec((block_rows, LANES), in_map),
                pl.BlockSpec((block_rows, LANES), in_map),
            ],
            out_specs=pl.BlockSpec((SUBLANES, LANES), lambda c, i: (c, 0)),
        ),
        compiler_params=pltpu.CompilerParams(
            dimension_semantics=("parallel", "arbitrary")),
    )(x2, t2)

    # Tiny epilogue: cross-lane + cross-split reduce, scale, negate.
    return -jnp.sum(partials) / jnp.float32(n)


def _reference(logits, labels, w_p, w_n, epsilon=1e-7):
    ps = jax.nn.sigmoid(jnp.squeeze(logits).astype(jnp.float32))
    t = labels.astype(jnp.float32)
    loss_pos = -jnp.mean(w_p * t * jnp.log(ps + epsilon))
    loss_neg = -jnp.mean(w_n * (1.0 - t) * jnp.log(1.0 - ps + epsilon))
    return loss_pos + loss_neg


if __name__ == "__main__":
    key = jax.random.PRNGKey(0)
    k1, k2, k3, k4 = jax.random.split(key, 4)

    # logits NCHW with a squeezable channel dim, labels NHW (module squeezes logits).
    logits = 3.0 * jax.random.normal(k1, (2, 1, 16, 16), dtype=jnp.float32)
    labels = (jax.random.uniform(k2, (2, 16, 16)) > 0.5).astype(jnp.float32)
    w_p, w_n = 2.0, 1.0

    loss = jax.block_until_ready(
        w_bce_with_logits_loss(logits, labels, w_p=w_p, w_n=w_n))
    ref = _reference(logits, labels, w_p, w_n)
    assert jnp.allclose(loss, ref, rtol=1e-5, atol=1e-5), (loss, ref)

    # Second check exercises the multi-block, 2-way split, clamped-block and
    # tail-mask paths at a small size by shrinking the block size.
    logits2 = 2.0 * jax.random.normal(k3, (3, 1, 40, 41), dtype=jnp.float32)
    labels2 = (jax.random.uniform(k4, (3, 40, 41)) > 0.3).astype(jnp.float32)
    loss2 = jax.block_until_ready(
        w_bce_with_logits_loss(logits2, labels2, w_p=0.7, w_n=1.3,
                               max_block_rows=16))
    ref2 = _reference(logits2, labels2, 0.7, 1.3)
    assert jnp.allclose(loss2, ref2, rtol=1e-5, atol=1e-5), (loss2, ref2)

    print("KERNEL_OK")
</pallas_src>

<mosaic_0001>
module attributes {stable_mosaic.version = 11 : i64} {
  func.func @_wbce_kernel(%arg0: i32, %arg1: i32, %arg2: memref<8x128xf32, #tpu.memory_space<vmem>>, %arg3: memref<8x128xf32, #tpu.memory_space<vmem>>, %arg4: memref<8x128xf32, #tpu.memory_space<vmem>>) attributes {dimension_semantics = [#tpu.dimension_semantics<parallel>, #tpu.dimension_semantics<arbitrary>], iteration_bounds = array<i64: 1, 1>, scalar_prefetch = 0 : i64, scratch_operands = 0 : i64, tpu.core_type = #tpu.core_type<tc>, window_params = [{transform_indices = @transform_0, window_bounds = array<i64: 8, 128>}, {transform_indices = @transform_1, window_bounds = array<i64: 8, 128>}, {transform_indices = @transform_2, window_bounds = array<i64: 8, 128>}]} {
    %c0_i32 = arith.constant 0 : i32
    %0 = arith.cmpi eq, %arg1, %c0_i32 : i32
    %1 = arith.extui %0 : i1 to i32
    %c0_i32_0 = arith.constant 0 : i32
    %2 = arith.cmpi ne, %1, %c0_i32_0 : i32
    scf.if %2 {
      %cst_18 = arith.constant 0.000000e+00 : f32
      %46 = vector.broadcast %cst_18 : f32 to vector<8x128xf32>
      %c0_19 = arith.constant 0 : index
      %c0_20 = arith.constant 0 : index
      %47 = vector.load %arg4[%c0_19, %c0_20] : memref<8x128xf32, #tpu.memory_space<vmem>>, vector<8x128xf32>
      tpu.vector_store %arg4[%c0_19, %c0_20], %46 {strides = array<i32>} : memref<8x128xf32, #tpu.memory_space<vmem>>, vector<8x128xf32>,
    } else {
    }
    %c0 = arith.constant 0 : index
    %c0_1 = arith.constant 0 : index
    %3 = vector.load %arg2[%c0, %c0_1] : memref<8x128xf32, #tpu.memory_space<vmem>>, vector<8x128xf32>
    %c0_2 = arith.constant 0 : index
    %c0_3 = arith.constant 0 : index
    %4 = vector.load %arg3[%c0_2, %c0_3] : memref<8x128xf32, #tpu.memory_space<vmem>>, vector<8x128xf32>
    %c1_i32 = arith.constant 1 : i32
    %5 = arith.muli %arg0, %c1_i32 : i32
    %6 = arith.addi %5, %arg1 : i32
    %7 = tpu.iota {dimensions = array<i32: 0>} : vector<8x128xi32>
    %c8_i32 = arith.constant 8 : i32
    %8 = arith.muli %6, %c8_i32 : i32
    %9 = vector.broadcast %8 : i32 to vector<8x128xi32>
    %10 = arith.addi %9, %7 : vector<8x128xi32>
    %c4_i32 = arith.constant 4 : i32
    %11 = vector.broadcast %c4_i32 : i32 to vector<8x128xi32>
    %12 = arith.cmpi slt, %10, %11 : vector<8x128xi32>
    %cst = arith.constant 0.000000e+00 : f32
    %13 = vector.broadcast %cst : f32 to vector<8x128xf32>
    %14 = arith.select %12, %3, %13 : vector<8x128xi1>, vector<8x128xf32>
    %cst_4 = arith.constant 0.000000e+00 : f32
    %15 = vector.broadcast %cst_4 : f32 to vector<8x128xf32>
    %16 = arith.select %12, %4, %15 : vector<8x128xi1>, vector<8x128xf32>
    %17 = arith.negf %14 : vector<8x128xf32>
    %18 = math.exp %17 : vector<8x128xf32>
    %cst_5 = arith.constant 1.000000e+00 : f32
    %19 = vector.broadcast %cst_5 : f32 to vector<8x128xf32>
    %20 = arith.addf %19, %18 : vector<8x128xf32>
    %21 = arith.divf %19, %20 : vector<8x128xf32>
    %cst_6 = arith.constant 2.000000e+00 : f32
    %22 = vector.broadcast %cst_6 : f32 to vector<8x128xf32>
    %23 = arith.mulf %22, %16 : vector<8x128xf32>
    %cst_7 = arith.constant 1.000000e-07 : f32
    %24 = vector.broadcast %cst_7 : f32 to vector<8x128xf32>
    %25 = arith.addf %21, %24 : vector<8x128xf32>
    %26 = math.log %25 : vector<8x128xf32>
    %27 = arith.mulf %23, %26 : vector<8x128xf32>
    %cst_8 = arith.constant 1.000000e+00 : f32
    %28 = vector.broadcast %cst_8 : f32 to vector<8x128xf32>
    %29 = arith.subf %28, %16 : vector<8x128xf32>
    %cst_9 = arith.constant 1.000000e+00 : f32
    %30 = vector.broadcast %cst_9 : f32 to vector<8x128xf32>
    %31 = arith.mulf %30, %29 : vector<8x128xf32>
    %cst_10 = arith.constant 1.000000e+00 : f32
    %32 = vector.broadcast %cst_10 : f32 to vector<8x128xf32>
    %33 = arith.subf %32, %21 : vector<8x128xf32>
    %cst_11 = arith.constant 1.000000e-07 : f32
    %34 = vector.broadcast %cst_11 : f32 to vector<8x128xf32>
    %35 = arith.addf %33, %34 : vector<8x128xf32>
    %36 = math.log %35 : vector<8x128xf32>
    %37 = arith.mulf %31, %36 : vector<8x128xf32>
    %38 = arith.addf %27, %37 : vector<8x128xf32>
    %cst_12 = arith.constant 0.000000e+00 : f32
    %39 = vector.broadcast %cst_12 : f32 to vector<8x128xf32>
    %40 = arith.select %12, %38, %39 : vector<8x128xi1>, vector<8x128xf32>
    %c0_13 = arith.constant 0 : index
    %c0_14 = arith.constant 0 : index
    %41 = vector.load %arg4[%c0_13, %c0_14] : memref<8x128xf32, #tpu.memory_space<vmem>>, vector<8x128xf32>
    %42 = vector.shape_cast %40 : vector<8x128xf32> to vector<1x8x128xf32>
    %cst_15 = arith.constant dense<0.000000e+00> : vector<8x128xf32>
    %43 = vector.multi_reduction <add>, %42, %cst_15 [0] : vector<1x8x128xf32> to vector<8x128xf32>
    %44 = arith.addf %41, %43 : vector<8x128xf32>
    %c0_16 = arith.constant 0 : index
    %c0_17 = arith.constant 0 : index
    %45 = vector.load %arg4[%c0_16, %c0_17] : memref<8x128xf32, #tpu.memory_space<vmem>>, vector<8x128xf32>
    tpu.vector_store %arg4[%c0_16, %c0_17], %44 {strides = array<i32>} : memref<8x128xf32, #tpu.memory_space<vmem>>, vector<8x128xf32>,
    return
  }
  func.func @transform_0(%arg0: i32, %arg1: i32) -> (i32, i32) {
    %c1_i32 = arith.constant 1 : i32
    %0 = arith.muli %arg0, %c1_i32 : i32
    %1 = arith.addi %0, %arg1 : i32
    %c0_i32 = arith.constant 0 : i32
    %2 = arith.minsi %1, %c0_i32 : i32
    %c0_i32_0 = arith.constant 0 : i32
    %c0_i32_1 = arith.constant 0 : i32
    return %2, %c0_i32_0 : i32, i32
  }
  func.func @transform_1(%arg0: i32, %arg1: i32) -> (i32, i32) {
    %c1_i32 = arith.constant 1 : i32
    %0 = arith.muli %arg0, %c1_i32 : i32
    %1 = arith.addi %0, %arg1 : i32
    %c0_i32 = arith.constant 0 : i32
    %2 = arith.minsi %1, %c0_i32 : i32
    %c0_i32_0 = arith.constant 0 : i32
    %c0_i32_1 = arith.constant 0 : i32
    return %2, %c0_i32_0 : i32, i32
  }
  func.func @transform_2(%arg0: i32, %arg1: i32) -> (i32, i32) {
    %c0_i32 = arith.constant 0 : i32
    %c0_i32_0 = arith.constant 0 : i32
    return %arg0, %c0_i32 : i32, i32
  }
}

</mosaic_0001>

<bundles_post_ra>
// kernel: tpu_custom_call.1
= control target key start
LH: loop header
LB: loop body
LE: loop exit
PB: predicated region body
PF: predicated region fallthrough
CT: control target
= control target key end

     0   :  { %7 = vsyncpa [#allocation3], 0  ;;  %s220_s0 = inlined_call_operand.hbm [shape: f32[8,128], index: 0, kind: input, shape index: {}]   ;;  %s221_s1 = inlined_call_operand.hbm [shape: f32[8,128], index: 1, kind: input, shape index: {}]   ;;  %s222_s2 = inlined_call_operand.hbm [shape: f32[8,128], index: 2, kind: output, shape index: {}]  }
   0x1   :  { %8 = vsyncpa [#allocation6], 0 }
   0x2   :  { %9 = vsyncpa [#allocation4], 0  ;;  %s190_s9 = smov [#allocation2]   ;;  %s191_s11 = smov [#allocation5]  }
   0x3   :  { %s21_s10 = sshll.u32 %s190_s9, 4  ;;  %s36_s12 = sshll.u32 %s191_s11, 4  ;;  %s22_s10 = int_to_ptr.vmem [resolvable:$true] %s21_s10  ;;  %s37_s12 = int_to_ptr.vmem [resolvable:$true] %s36_s12 }
   0x4   :  { %s132_s13 = scalar_lea.vmem %s22_s10, 128  ;;  %p137_p1 = scmp.lt.s32.totalorder %s22_s10, %s22_s10 }
   0x5   :  { %p133_p0 = scmp.ne.s32.totalorder %s22_s10, %s132_s13  ;;  %p138_p2 = scmp.lt.s32.totalorder %s132_s13, %s132_s13 }
   0x7   :  { %p139_p3 = por %p138_p2, %p137_p1 }
   0x9   :  { %p140_p4 = pnand %p139_p3, %p133_p0 }
   0xb   :  { %143 = shalt.err (!%p140_p4)
}
   0xc   :  { %24 = dma.hbm_to_vmem [thread:$0]  %s220_s0, 128, %s22_s10, [#allocation3]  }
   0xd   :  { %s152_s16 = scalar_lea.vmem %s37_s12, 128  ;;  %p157_p6 = scmp.lt.s32.totalorder %s37_s12, %s37_s12 }
   0xe   :  { %p153_p5 = scmp.ne.s32.totalorder %s37_s12, %s152_s16  ;;  %p158_p7 = scmp.lt.s32.totalorder %s152_s16, %s152_s16 }
  0x10   :  { %p159_p8 = por %p158_p7, %p157_p6 }
  0x12   :  { %p160_p9 = pnand %p159_p8, %p153_p5 }
  0x14   :  { %163 = shalt.err (!%p160_p9)
}
  0x15   :  { %39 = dma.hbm_to_vmem [thread:$0]  %s221_s1, 128, %s37_s12, [#allocation6]  }
  0x16   :  { %184 = dma.done.wait [#allocation3], 128  }
  0x17   :  { %185 = vsyncadd [#allocation3], 4294967168 }
  0x18   :  { %186 = dma.done.wait [#allocation6], 128  }
  0x19   :  { %187 = vsyncadd [#allocation6], 4294967168  ;;  %v60_v0 = vlaneseq  ;;  %v57_v2 = vld [vmem:[#allocation2] sm:$0xff]  ;;  %v58_v11 = vld [vmem:[#allocation5] sm:$0xff]  ;;  %s192_s0 = smov [#allocation7]  }
  0x1a   :  { %s97_s1 = sshll.u32 %s192_s0, 4  ;;  %s98_s1 = int_to_ptr.vmem [resolvable:$true] %s97_s1 }
  0x1b   :  { %v61_v1 = vshrl.u32 %v60_v0, 7  ;;  %s164_s19 = scalar_lea.vmem %s98_s1, 128  ;;  %p169_p11 = scmp.lt.s32.totalorder %s98_s1, %s98_s1 }
  0x1c   :  { %p165_p10 = scmp.ne.s32.totalorder %s98_s1, %s164_s19  ;;  %p170_p12 = scmp.lt.s32.totalorder %s164_s19, %s164_s19 }
  0x1d   :  { %vm65_vm0 = vcmp.lt.s32.totalorder %v61_v1, 4 }
  0x1e   :  { %v66_v3 = vsel %vm65_vm0, %v57_v2, 0.0  ;;  %v67_v12 = vsel %vm65_vm0, %v58_v11, 0.0  ;;  %p171_p13 = por %p170_p12, %p169_p11 }
  0x1f   :  { %v111_v4 = vmul.f32 -1.442695, %v66_v3  ;;  %v74_v13 = vmul.f32 2.0, %v67_v12  ;;  %v79_v16 = vsub.f32 1.0, %v67_v12 }
  0x20   :  { %p172_p0 = pnand %p171_p13, %p165_p10 }
  0x21   :  { %116 = vpow2.f32 %v111_v4 }
  0x2e   :  { %v117_v5 = vpop.eup %116 }
  0x2f   :  { %v71_v6 = vadd.f32 1.0, %v117_v5 }
  0x31   :  { %118 = vrcp.f32 %v71_v6 }
  0x3e   :  { %v119_v7 = vpop.eup %118 }
  0x3f   :  { %v75_v8 = vadd.f32 1e-07, %v119_v7  ;;  %v80_v9 = vsub.f32 1.0, %v119_v7 }
  0x41   :  { %120 = vlog2.f32 %v75_v8  ;;  %v81_v10 = vadd.f32 1e-07, %v80_v9 }
  0x43   :  { %122 = vlog2.f32 %v81_v10 }
  0x4e   :  { %v121_v14 = vpop.eup %120 }
  0x4f   :  { %v77_v15 = vmul.f32 0.6931472, %v121_v14 }
  0x50   :  { %v123_v17 = vpop.eup %122 }
  0x51   :  { %v78_v18 = vmul.f32 %v77_v15, %v74_v13  ;;  %v83_v19 = vmul.f32 0.6931472, %v123_v17 }
  0x53   :  { %v84_v20 = vmul.f32 %v83_v19, %v79_v16 }
  0x55   :  { %v85_v21 = vadd.f32 %v84_v20, %v78_v18 }
  0x57   :  { %v86_v22 = vsel %vm65_vm0, %v85_v21, 0.0 }
  0x58   :  { %90 = vst [vmem:[#allocation7] sm:$0xff] %v86_v22 }
  0x59   :  { %175 = shalt.err (!%p172_p0)
}
  0x5a   :  { %100 = dma.vmem_to_hbm [thread:$0]  %s98_s1, 128, %s222_s2, [#allocation4]  }
  0x5b   :  { %188 = dma.done.wait [#allocation4], 128  }
  0x5c   :  { %189 = vsyncadd [#allocation4], 4294967168 }
  0x5d   :  { %104 = vsyncpa [#allocation3], 1 }
  0x5e   :  { %105 = vsyncpa [#allocation6], 1 }
  0x5f   :  { %106 = vsyncpa [#allocation4], 1 }

</bundles_post_ra>
